<compile_context>
chip_gen: v5e
topology: v5e:2x2
jax: 0.10.0
libtpu: 0.0.40
codegen_flags: <defaults>
</compile_context>

<pallas_src>
import functools

import jax
import jax.numpy as jnp
from jax.experimental import pallas as pl
from jax.experimental.pallas import tpu as pltpu

_LANE = 128


def _cdiv(a, b):
    return -(-a // b)


def _pool_windows(in_size, out_size):
    """PyTorch adaptive pooling windows: start=floor(i*I/O), end=ceil((i+1)*I/O)."""
    return tuple(
        ((i * in_size) // out_size, _cdiv((i + 1) * in_size, out_size))
        for i in range(out_size)
    )


def _vmem_budgets():
    """(block_budget_bytes, vmem_limit_cap_bytes) for this TPU generation."""
    phys = 64 * 1024 * 1024  # conservative fallback (v7x-sized VMEM)
    try:
        info = pltpu.get_tpu_info()
        phys = int(getattr(info, "vmem_capacity_bytes", phys)) or phys
    except Exception:
        pass
    # Double-buffered in+out blocks get ~3/8 of physical VMEM (24 MiB on v7x's
    # 64 MiB, 48 MiB on v5e/v6e's 128 MiB); never request more than 3/4 of it.
    return min(phys * 3 // 8, 48 * 1024 * 1024), phys * 3 // 4


def _pick_tile_c(c, rows_in, w, rows_out, out_w, itemsize, budget):
    """Largest lane tile (128-multiple, <= C) whose double-buffered in+out blocks
    fit `budget`; C < 128 simply uses the full lane extent (legal full-dim block)."""
    per_lane = 2 * (rows_in * w + rows_out * out_w) * itemsize  # double-buffered
    if c <= _LANE:
        tile = c
    else:
        tile = (budget // max(per_lane, 1)) // _LANE * _LANE
        tile = max(_LANE, min(tile, (c // _LANE) * _LANE))
    return tile, per_lane * tile


def _w_reduce(band, w_windows, out_w, kw):
    """Reduce a (W, T) band to (out_w, T) over the adaptive W windows."""
    if kw is not None:
        # W % out_w == 0: one regrouping + a kw-way max replaces out_w unaligned
        # sublane slices and a concatenate.
        return jnp.max(band.reshape(out_w, kw, band.shape[-1]), axis=1)
    cols = [jnp.max(band[ws:we, :], axis=0, keepdims=True) for ws, we in w_windows]
    return jnp.concatenate(cols, axis=0)


def _pool_band_kernel(x_ref, o_ref, *, w_windows, out_w, kw):
    # x_ref: (kh, W, T) -- one non-overlapping H band (H % out_h == 0 path).
    # o_ref: (1, out_w, T).
    band = jnp.max(x_ref[...], axis=0)          # leading-axis reduce: pure VPU maxes
    o_ref[0, :, :] = _w_reduce(band, w_windows, out_w, kw)


def _pool_full_kernel(x_ref, o_ref, *, h_windows, w_windows, out_w, kw):
    # General (possibly overlapping) H windows; full H resident per block.
    # NOTE: statically unrolled over out_h (and out_w when W % out_w != 0);
    # acceptable for the small adaptive output sizes this module is used with.
    for r, (hs, he) in enumerate(h_windows):
        band = jnp.max(x_ref[hs:he, :, :], axis=0)
        o_ref[r, :, :] = _w_reduce(band, w_windows, out_w, kw)


def adaptive_max_pool2d_hwc(x_hwc, out_h, out_w):
    """Adaptive max pool on channels-last (H, W, C) input -> (out_h, out_w, C).
    Channels-last callers should use this directly (no relayout needed)."""
    H, W, C = x_hwc.shape
    itemsize = jnp.dtype(x_hwc.dtype).itemsize
    budget, limit_cap = _vmem_budgets()

    h_windows = _pool_windows(H, out_h)
    w_windows = _pool_windows(W, out_w)
    kw = W // out_w if W % out_w == 0 else None

    cost = pl.CostEstimate(
        flops=H * W * C,  # ~one compare per input element
        transcendentals=0,
        bytes_accessed=(H * W + out_h * out_w) * C * itemsize,
    )

    if H % out_h == 0:
        # Non-overlapping H bands: stream one (H/out_h, W, TILE_C) band per step.
        kh = H // out_h
        tile_c, need = _pick_tile_c(C, kh, W, 1, out_w, itemsize, budget)
        n_c = _cdiv(C, tile_c)
        if out_h == 1 and n_c == 1 and tile_c >= 2 * _LANE:
            # Keep >= 2 steps on a parallel axis so both v7x TCs get work.
            tile_c = (tile_c // 2) // _LANE * _LANE
            n_c = _cdiv(C, tile_c)
            need = 2 * (kh * W + out_w) * tile_c * itemsize
        kernel = functools.partial(
            _pool_band_kernel, w_windows=w_windows, out_w=out_w, kw=kw)
        grid = (out_h, n_c)
        in_specs = [pl.BlockSpec((kh, W, tile_c), lambda r, c: (r, 0, c))]
        out_spec = pl.BlockSpec((1, out_w, tile_c), lambda r, c: (r, 0, c))
        semantics = ("parallel", "parallel")
    else:
        # General fallback (overlapping adaptive H windows): full H resident,
        # lane axis tiled on the grid.
        # TODO(synk): stream H per output row (pl.Element/BoundedSlice offsets)
        # instead of keeping full H resident for very large general-path inputs.
        tile_c, need = _pick_tile_c(C, H, W, out_h, out_w, itemsize, budget)
        n_c = _cdiv(C, tile_c)
        if n_c == 1 and tile_c >= 2 * _LANE:
            tile_c = (tile_c // 2) // _LANE * _LANE
            n_c = _cdiv(C, tile_c)
            need = 2 * (H * W + out_h * out_w) * tile_c * itemsize
        kernel = functools.partial(
            _pool_full_kernel, h_windows=h_windows,
            w_windows=w_windows, out_w=out_w, kw=kw)
        grid = (n_c,)
        in_specs = [pl.BlockSpec((H, W, tile_c), lambda c: (0, 0, c))]
        out_spec = pl.BlockSpec((out_h, out_w, tile_c), lambda c: (0, 0, c))
        semantics = ("parallel",)

    # Always set an explicit scoped-VMEM limit (v5e's default is 16 MiB) with
    # headroom for double-buffering + internal scratch, capped well under this
    # generation's physical VMEM (important on v7x's 64 MiB).
    vmem_limit = int(min(max(need * 3 // 2 + (2 << 20), 16 << 20), limit_cap))

    return pl.pallas_call(
        kernel,
        out_shape=jax.ShapeDtypeStruct((out_h, out_w, C), x_hwc.dtype),
        grid_spec=pltpu.PrefetchScalarGridSpec(
            num_scalar_prefetch=0,
            grid=grid,
            in_specs=in_specs,
            out_specs=out_spec,
        ),
        compiler_params=pltpu.CompilerParams(
            dimension_semantics=semantics,
            vmem_limit_bytes=vmem_limit,
        ),
        cost_estimate=cost,
    )(x_hwc)


def adaptive_max_pool2d(x, out_h, out_w):
    """x: (N, C, H, W) -> (N, C, out_h, out_w), matching F.adaptive_max_pool2d
    (values only)."""
    N, C, H, W = x.shape
    # Single relayout copy (NCHW -> channels-last) so the fused N*C axis is
    # lane-dense inside the kernel; the lane pad was removed so this is the only
    # extra HBM pass, and channels-last callers can skip it entirely via
    # adaptive_max_pool2d_hwc.
    # TODO(synk): NCHW-native kernel variant (block (tile_nc, H, W), in-layout
    # reductions) to remove this relayout pass for NCHW callers as well.
    x_hwc = jnp.transpose(x, (2, 3, 0, 1)).reshape(H, W, N * C)
    out_hwc = adaptive_max_pool2d_hwc(x_hwc, out_h, out_w)
    return jnp.transpose(out_hwc.reshape(out_h, out_w, N, C), (2, 3, 0, 1))


def _reference_adaptive_max_pool2d(x, out_h, out_w):
    # Pure-JAX reference (same floor/ceil boundary rule as PyTorch).
    rows = []
    for (hs, he) in _pool_windows(x.shape[2], out_h):
        cols = []
        for (ws, we) in _pool_windows(x.shape[3], out_w):
            cols.append(jnp.max(x[:, :, hs:he, ws:we], axis=(2, 3)))
        rows.append(jnp.stack(cols, axis=-1))
    return jnp.stack(rows, axis=-2)


if __name__ == "__main__":
    key = jax.random.PRNGKey(0)

    # Case 1: banded path (H % out_h == 0, W % out_w == 0), C < 128 (full-dim lane tile).
    x1 = jax.random.normal(key, (2, 4, 16, 16), dtype=jnp.float32)
    y1 = jax.block_until_ready(adaptive_max_pool2d(x1, 4, 4))
    y1_ref = _reference_adaptive_max_pool2d(x1, 4, 4)
    assert y1.shape == (2, 4, 4, 4)
    assert jnp.allclose(y1, y1_ref), "mismatch vs reference (banded path)"

    # Case 2: general fallback path (overlapping H windows, ragged W windows).
    x2 = jax.random.normal(jax.random.PRNGKey(0), (1, 3, 10, 7), dtype=jnp.float32)
    y2 = jax.block_until_ready(adaptive_max_pool2d(x2, 3, 3))
    y2_ref = _reference_adaptive_max_pool2d(x2, 3, 3)
    assert y2.shape == (1, 3, 3, 3)
    assert jnp.allclose(y2, y2_ref), "mismatch vs reference (general path)"

    # Case 3: fused channels > 128 -> multiple lane tiles with a ragged last tile
    # (exercises the no-pad cdiv grid and masked partial writeback).
    x3 = jax.random.normal(jax.random.PRNGKey(0), (2, 96, 8, 8), dtype=jnp.float32)
    y3 = jax.block_until_ready(adaptive_max_pool2d(x3, 2, 2))
    y3_ref = _reference_adaptive_max_pool2d(x3, 2, 2)
    assert y3.shape == (2, 96, 2, 2)
    assert jnp.allclose(y3, y3_ref), "mismatch vs reference (ragged lane tile)"

    # TODO(synk): return_indices variant of adaptive_max_pool2d not implemented
    # (the wrapped module's forward returns values only).
    print("KERNEL_OK")
</pallas_src>

<mosaic_0001>
module attributes {stable_mosaic.version = 11 : i64} {
  func.func @_pool_band_kernel(%arg0: i32, %arg1: i32, %arg2: memref<4x16x8xf32, #tpu.memory_space<vmem>>, %arg3: memref<1x4x8xf32, #tpu.memory_space<vmem>>) attributes {dimension_semantics = [#tpu.dimension_semantics<parallel>, #tpu.dimension_semantics<parallel>], iteration_bounds = array<i64: 4, 1>, scalar_prefetch = 0 : i64, scratch_operands = 0 : i64, tpu.core_type = #tpu.core_type<tc>, window_params = [{transform_indices = @transform_0, window_bounds = array<i64: 4, 16, 8>}, {transform_indices = @transform_1, window_bounds = array<i64: 1, 4, 8>}]} {
    %c0 = arith.constant 0 : index
    %c0_0 = arith.constant 0 : index
    %c0_1 = arith.constant 0 : index
    %0 = vector.load %arg2[%c0, %c0_0, %c0_1] : memref<4x16x8xf32, #tpu.memory_space<vmem>>, vector<4x16x8xf32>
    %cst = arith.constant dense<0xFF800000> : vector<16x8xf32>
    %1 = vector.multi_reduction <maximumf>, %0, %cst [0] : vector<4x16x8xf32> to vector<16x8xf32>
    %2 = vector.shape_cast %1 : vector<16x8xf32> to vector<4x4x8xf32>
    %cst_2 = arith.constant dense<0xFF800000> : vector<4x8xf32>
    %3 = vector.multi_reduction <maximumf>, %2, %cst_2 [1] : vector<4x4x8xf32> to vector<4x8xf32>
    %c0_3 = arith.constant 0 : index
    %c0_4 = arith.constant 0 : index
    %c0_5 = arith.constant 0 : index
    %4 = vector.load %arg3[%c0_3, %c0_4, %c0_5] : memref<1x4x8xf32, #tpu.memory_space<vmem>>, vector<1x4x8xf32>
    %5 = vector.shape_cast %4 : vector<1x4x8xf32> to vector<4x8xf32>
    %6 = vector.shape_cast %3 : vector<4x8xf32> to vector<1x4x8xf32>
    tpu.vector_store %arg3[%c0_3, %c0_4, %c0_5], %6 {strides = array<i32>} : memref<1x4x8xf32, #tpu.memory_space<vmem>>, vector<1x4x8xf32>,
    return
  }
  func.func @transform_0(%arg0: i32, %arg1: i32) -> (i32, i32, i32) {
    %c0_i32 = arith.constant 0 : i32
    %c0_i32_0 = arith.constant 0 : i32
    return %arg0, %c0_i32, %arg1 : i32, i32, i32
  }
  func.func @transform_1(%arg0: i32, %arg1: i32) -> (i32, i32, i32) {
    %c0_i32 = arith.constant 0 : i32
    %c0_i32_0 = arith.constant 0 : i32
    return %arg0, %c0_i32, %arg1 : i32, i32, i32
  }
}

</mosaic_0001>

<bundles_post_ra>
// kernel: tpu_custom_call.1
= control target key start
LH: loop header
LB: loop body
LE: loop exit
PB: predicated region body
PF: predicated region fallthrough
CT: control target
= control target key end

     0   :  { %6 = vsyncpa [#allocation3], 0  ;;  %s579_s0 = inlined_call_operand.vmem [shape: f32[16,16,8], index: 0, kind: input, shape index: {}]   ;;  %s580_s1 = inlined_call_operand.hbm [shape: f32[4,4,8], index: 1, kind: output, shape index: {}]  }
   0x1   :  { %8 = vsyncpa [#allocation3 + $0x1], 0  ;;  %s465_s6 = smov 0   ;;  %s467_s7 = smov 0  }
   0x2   :  { %s469_s8 = smov 0   ;;  %s471_s9 = smov 0  }
   0x3   :  { %s473_s10 = smov 0   ;;  %s475_s11 = smov 0  }
   0x4 LB: > { %s306_s12 = sadd.s32 4294967295, %s453_s11   ;;  %s307_s13 = sadd.s32 4294967294, %s453_s11   ;;  %s453_s11 = sphi %s475_s11, %s14_s11   ;;  %s449_s10 = sphi %s473_s10, %s587_s10   ;;  %s445_s9 = sphi %s471_s9, %s586_s9   ;;  %s441_s8 = sphi %s469_s8, %s585_s8   ;;  %s437_s7 = sphi %s467_s7, %s584_s7   ;;  %s433_s6 = sphi %s465_s6, %s583_s6  }
   0x5   : > { %s26_s14 = sadd.s32 1, %s449_s10  ;;  %s63_s15 = sadd.s32 1, %s441_s8 }
   0x6   : > { %p28_p0 = scmp.ge.s32.totalorder %s26_s14, 4  ;;  %p73_p1 = scmp.ne.s32.totalorder %s441_s8, %s437_s7 }
   0x7   : > { %p74_p2 = scmp.eq.s32.totalorder %s306_s12, 3  ;;  %p79_p3 = scmp.ne.s32.totalorder %s437_s7, %s433_s6 }
   0x8   : > { %s589_s14 = smov (%p28_p0, %s26_s14), 0  ;;  %p80_p5 = scmp.eq.s32.totalorder %s307_s13, 3 }
   0x9   : > { %p503_p4 = por %p74_p2, %p73_p1  ;;  %s58_s17 = ssub.s32 %s449_s10, %s589_s14 }
   0xa   : > { %p310_p6 = scmp.ge.s32.totalorder %s453_s11, 1  ;;  %p61_p7 = scmp.eq.s32.totalorder %s58_s17, 0 }
   0xb   : > { %p510_p8 = por %p80_p5, %p79_p3  ;;  %p111_p9 = scmp.lt.s32.totalorder %s453_s11, 5 }
   0xc   : > { %s516_s19 = scalar_select %p61_p7, %s441_s8, %s63_s15  }
   0xd   : > { %p112_p10 = pnand %p310_p6, %p111_p9 }
   0xe   : > { %s518_s20 = sshll.u32 (!%p112_p10), %s445_s9, 2  ;;  %s132_s26 = sand.u32 (!%p112_p10), 1, %s437_s7  }
   0xf   : > { %115 = sbr.rel (%p112_p10) target bundleno = 53 (0x35), region = 24  ;;  %p136_p11 = scmp.lt.s32.totalorder (!%p112_p10), %s518_s20, 15 }
  0x10   : > { %s311_s27 = sshll.u32 (!%p112_p10), %s132_s26, 2  ;;  %s227_s30 = scalar_lea.hbm (!%p112_p10), %s580_s1, %s518_s20 }
  0x11   : > { %s134_s2 = scalar_lea.vmem (!%p112_p10), [#allocation2], %s311_s27  ;;  %s231_s4 = sshll.u32 (!%p112_p10), %s227_s30, 4  ;;  %s232_s4 = int_to_ptr.hbm [resolvable:$true] %s231_s4 }
  0x12   : > { %s229_s3 = sshll.u32 (!%p112_p10), %s134_s2, 4  ;;  %s216_s5 = scalar_lea.sflag (!%p112_p10), [#allocation3], %s132_s26  ;;  %s230_s3 = int_to_ptr.vmem [resolvable:$true] %s229_s3 }
  0x13   : > { %s389_s9 = sshra.s32 (!%p112_p10), %s232_s4, 4  ;;  %s395_s17 = scalar_lea.hbm (!%p112_p10), %s580_s1, 16  ;;  %s390_s9 = int_to_ptr.hbm [resolvable:$true] %s389_s9 }
  0x14   : > { %s137_s21 = scalar_select %p136_p11, %s518_s20, 15  ;;  %vm153_vm0 = vcmask 64512   ;;  %vm174_vm1 = vcmask 60416   ;;  %vm207_vm2 = vcmask 1041409   ;;  %vm209_vm3 = vcmask 1042434  }
  0x15   : > { %vm211_vm4 = vcmask 1043459   ;;  %s391_s12 = scalar_lea.hbm %s390_s9, 4  ;;  %p396_p1 = scmp.lt.s32.totalorder %s390_s9, %s580_s1 }
  0x16   : > { %s319_s22 = sshll.u32 %s137_s21, 4  ;;  %p392_p12 = scmp.ne.s32.totalorder %s390_s9, %s391_s12 }
  0x17   : > { %s143_s25 = scalar_lea.vmem %s579_s0, %s319_s22  ;;  %p397_p2 = scmp.lt.s32.totalorder %s395_s17, %s391_s12 }
  0x18   : > { %v145_v0 = vld [vmem:[%s143_s25] sm:$0xff]  ;;  %v146_v1 = vld [vmem:[%s143_s25 + $0x8] sm:$0xff]  ;;  %v147_v2 = vld [vmem:[%s143_s25 + $0x10] sm:$0xff]  ;;  %p393_p13 = pnand %p392_p12, %p503_p4 }
  0x19   : > { %v148_v3 = vld [vmem:[%s143_s25 + $0x18] sm:$0xff]  ;;  %v149_v4 = vld [vmem:[%s143_s25 + $0x20] sm:$0xff]  ;;  %v150_v5 = vld [vmem:[%s143_s25 + $0x28] sm:$0xff]  ;;  %v154_v6 = vsel %vm153_vm0, %v145_v0, -inf  ;;  %v155_v7 = vsel %vm153_vm0, %v147_v2, -inf  ;;  %v161_v8 = vsel %vm153_vm0, %v146_v1, -inf  ;;  %p398_p3 = por %p397_p2, %p396_p1 }
  0x1a   : > { %v151_v9 = vld [vmem:[%s143_s25 + $0x30] sm:$0xff]  ;;  %v152_v10 = vld [vmem:[%s143_s25 + $0x38] sm:$0xff]  ;;  %v156_v11 = vsel %vm153_vm0, %v149_v4, -inf  ;;  %v162_v12 = vsel %vm153_vm0, %v148_v3, -inf  ;;  %v163_v13 = vsel %vm153_vm0, %v150_v5, -inf  ;;  %p394_p0 = pneg %p393_p13 }
  0x1b   : > { %v157_v14 = vmax.f32 %v154_v6, %v156_v11  ;;  %v158_v15 = vsel %vm153_vm0, %v151_v9, -inf  ;;  %v164_v16 = vmax.f32 %v161_v8, %v163_v13  ;;  %v165_v17 = vsel %vm153_vm0, %v152_v10, -inf }
  0x1c   : > { %v159_v18 = vmax.f32 %v155_v7, %v158_v15  ;;  %v166_v19 = vmax.f32 %v162_v12, %v165_v17  ;;  %p399_p5 = pnand %p398_p3, %p394_p0 }
  0x1e   : > { %v160_v20 = vmax.f32 %v157_v14, %v159_v18  ;;  %v167_v21 = vmax.f32 %v164_v16, %v166_v19 }
  0x20   : > { %v170_v22 = vrot.slane %v160_v20, 4  ;;  %v171_v23 = vrot.slane %v167_v21, 4  ;;  %v175_v24 = vsel %vm174_vm1, %v160_v20, -inf  ;;  %v189_v25 = vsel %vm174_vm1, %v167_v21, -inf }
  0x21   : > { %v176_v26 = vrot.slane %v175_v24, 4  ;;  %v190_v27 = vrot.slane %v189_v25, 4 }
  0x22   : > { %v182_v28 = vsel %vm174_vm1, %v170_v22, -inf  ;;  %v196_v29 = vsel %vm174_vm1, %v171_v23, -inf }
  0x23   : > { %v177_v30 = vmax.f32 %v175_v24, %v176_v26  ;;  %v183_v31 = vrot.slane %v182_v28, 4  ;;  %v191_v32 = vmax.f32 %v189_v25, %v190_v27  ;;  %v197_v33 = vrot.slane %v196_v29, 4 }
  0x25   : > { %v178_v34 = vrot.slane %v177_v30, 2  ;;  %v184_v35 = vmax.f32 %v182_v28, %v183_v31  ;;  %v192_v36 = vrot.slane %v191_v32, 2  ;;  %v198_v37 = vmax.f32 %v196_v29, %v197_v33 }
  0x27   : > { %v179_v38 = vmax.f32 %v177_v30, %v178_v34  ;;  %v185_v39 = vrot.slane %v184_v35, 2  ;;  %v193_v40 = vmax.f32 %v191_v32, %v192_v36  ;;  %v199_v41 = vrot.slane %v198_v37, 2 }
  0x29   : > { %v180_v42 = vrot.slane %v179_v38, 1  ;;  %v186_v43 = vmax.f32 %v184_v35, %v185_v39  ;;  %v194_v44 = vrot.slane %v193_v40, 1  ;;  %v200_v45 = vmax.f32 %v198_v37, %v199_v41 }
  0x2b   : > { %v181_v46 = vmax.f32 %v179_v38, %v180_v42  ;;  %v187_v47 = vrot.slane %v186_v43, 1  ;;  %v201_v48 = vrot.slane %v200_v45, 1  ;;  %v195_v49 = vmax.f32 %v193_v40, %v194_v44 }
  0x2d   : > { %v188_v50 = vmax.f32 %v186_v43, %v187_v47  ;;  %v202_v51 = vmax.f32 %v200_v45, %v201_v48 }
  0x2f   : > { %v208_v52 = vsel %vm207_vm2, %v188_v50, %v181_v46 }
  0x30   : > { %v210_v53 = vsel %vm209_vm3, %v195_v49, %v208_v52 }
  0x31   : > { %v212_v54 = vsel %vm211_vm4, %v202_v51, %v210_v53 }
  0x32   : > { %214 = vst.msk [vmem:[%s134_s2] sm:$0xf] %vm174_vm1, %v212_v54 }
  0x33   : > { %402 = shalt.err (!%p399_p5)
}
  0x34   : > { %320 = dma.vmem_to_hbm [thread:$0]  (%p503_p4), %s230_s3, 64, %s232_s4, %s216_s5  }
  0x35 PF: > { %p326_p6 = scmp.ge.s32.totalorder %s453_s11, 2  ;;  %s243_s22 = sand.u32 1, %s433_s6  }
  0x36   : > { %s244_s23 = scalar_lea.sflag [#allocation3], %s243_s22 }
  0x37   : > { %p323_p7 = pnand %p326_p6, %p510_p8 }
  0x39   : > { %p324_p9 = pneg %p323_p7 }
  0x3b   : > { %428 = dma.done.wait (%p324_p9), %s244_s23, 64  }
  0x3c   : > { %430 = vsyncadd (%p324_p9), %s244_s23, 4294967232  ;;  %s14_s11 = sadd.s32 1, %s453_s11   ;;  %s583_s6 = smov %s437_s7 }
  0x3d   : > { %p11_p10 = scmp.ge.s32.totalorder %s14_s11, 6   ;;  %s584_s7 = smov %s441_s8 }
  0x3e   : > { %s585_s8 = smov %s516_s19  ;;  %s586_s9 = smov %s449_s10 }
  0x3f   : > { %s587_s10 = smov %s589_s14  ;;  %13 = sbr.rel (!%p11_p10) target bundleno = 4 (0x4), region = 59 }
  0x44   :  { %250 = vsyncpa [#allocation3], 1 }
  0x45   :  { %252 = vsyncpa [#allocation3 + $0x1], 1 }

</bundles_post_ra>
